<compile_context>
chip_gen: v5e
topology: v5e:2x2
jax: 0.10.0
libtpu: 0.0.40
codegen_flags: <defaults>
</compile_context>

<pallas_src>
import jax
import jax.numpy as jnp
from jax.experimental import pallas as pl
from jax.experimental.pallas import tpu as pltpu

_LANES = 128
_TILE_BYTES = 2 << 20            # ~2 MiB tiles: 85%+ of HBM roofline, low step overhead


def _mish1_kernel(x_ref, o_ref):
    x = x_ref[...]
    if x.dtype == jnp.bfloat16:
        # bf16 EUP path (native on v6e/v7x, legalized via f32 on v5e).
        # Output is bf16 anyway, so the precision loss is within output rounding.
        y = x * jnp.tanh(jnp.exp(x))
    else:
        xf = x.astype(jnp.float32)
        y = xf * jnp.tanh(jnp.exp(xf))
    o_ref[...] = y.astype(o_ref.dtype)


def _round_up(n: int, m: int) -> int:
    return -(-n // m) * m


def _sublane_multiple(itemsize: int) -> int:
    # Packed-sublane row multiple: 8 for f32, 16 for bf16, 32 for int8/fp8.
    return {4: 8, 2: 16, 1: 32}.get(itemsize, 8)


def _choose_tile_rows(rows: int, row_bytes: int, sub: int, tile_bytes: int) -> int:
    """Rows per block: ~tile_bytes tiles, dtype-aligned, never shrunk below
    ~512 KiB just to add grid steps, grid nudged even for v7x megacore."""
    min_tile = min(512 << 10, max(tile_bytes // 2, row_bytes))
    tr_budget = max(1, tile_bytes // row_bytes)

    if rows <= tr_budget:
        # Whole array fits in one tile.  Split in two only if each half is
        # still >= min_tile (pipelining + v7x 2-TC sharding); otherwise a
        # single big block beats several tiny ones (0.35 us/step overhead).
        if rows * row_bytes >= 2 * min_tile and rows > sub:
            tr = _round_up(pl.cdiv(rows, 2), sub)
            if tr < rows:
                return tr
        return rows

    tr = max(sub, (tr_budget // sub) * sub)
    grid = pl.cdiv(rows, tr)
    if grid % 2 == 1:
        # Even grid -> equal split across v7x's two TensorCores (no-op on v5e/v6e).
        tr_even = _round_up(pl.cdiv(rows, grid + 1), sub)
        if tr_even * row_bytes >= min_tile and pl.cdiv(rows, tr_even) % 2 == 0:
            tr = tr_even
    return tr


def _run_tiled(x2d: jax.Array, tile_bytes: int) -> jax.Array:
    rows, cols = x2d.shape
    itemsize = jnp.dtype(x2d.dtype).itemsize
    sub = _sublane_multiple(itemsize)
    tr = _choose_tile_rows(rows, cols * itemsize, sub, tile_bytes)
    grid = pl.cdiv(rows, tr)

    cost = pl.CostEstimate(
        flops=x2d.size,                      # one mul per element
        transcendentals=2 * x2d.size,        # exp + tanh per element
        bytes_accessed=2 * x2d.size * itemsize,
    )
    return pl.pallas_call(
        _mish1_kernel,
        out_shape=jax.ShapeDtypeStruct((rows, cols), x2d.dtype),
        grid_spec=pltpu.PrefetchScalarGridSpec(
            num_scalar_prefetch=0,
            grid=(grid,),
            in_specs=[pl.BlockSpec((tr, cols), lambda i: (i, 0))],
            out_specs=pl.BlockSpec((tr, cols), lambda i: (i, 0)),
        ),
        compiler_params=pltpu.CompilerParams(
            dimension_semantics=("parallel",)),
        cost_estimate=cost,
    )(x2d)


def mish1(x: jax.Array, *, tile_bytes: int = _TILE_BYTES) -> jax.Array:
    """y = x * tanh(exp(x)) elementwise via a Pallas TPU kernel (any shape)."""
    orig_shape = x.shape
    total = x.size
    if total == 0:
        return x
    itemsize = jnp.dtype(x.dtype).itemsize

    if total % _LANES == 0:
        # Fast path: lane-dense (rows, 128) view, zero extra HBM copies.
        # Non-divisible grids get a masked boundary block -- no row padding.
        out = _run_tiled(x.reshape(total // _LANES, _LANES), tile_bytes)
        return out.reshape(orig_shape)

    # Lane-ragged (total % 128 != 0): collapse trailing dims into the lane
    # axis (free reshape) as long as a sublane-multiple of rows still fits a
    # single tile -- keeps HBM traffic at 1x instead of ~3x from pad+slice.
    sub = _sublane_multiple(itemsize)
    col_limit = max(_LANES, tile_bytes // (sub * itemsize))   # in elements
    cols = 1
    for d in reversed(orig_shape):
        if cols * d > col_limit:
            break
        cols *= d
    if cols == total or cols > 1:
        out = _run_tiled(x.reshape(total // cols, cols), tile_bytes)
        return out.reshape(orig_shape)

    # Rare fallback: huge ragged array whose last dim alone exceeds the tile
    # budget -> pad to a lane multiple and slice the tail back off.
    rows = pl.cdiv(total, _LANES)
    flat = jnp.pad(x.reshape(-1), (0, rows * _LANES - total))
    out = _run_tiled(flat.reshape(rows, _LANES), tile_bytes)
    return out.reshape(-1)[:total].reshape(orig_shape)


if __name__ == "__main__":
    key = jax.random.PRNGKey(0)

    # Small NCHW input consistent with the module's typical use (lane-aligned).
    x = jax.random.normal(key, (2, 4, 16, 16), dtype=jnp.float32)
    y = jax.block_until_ready(mish1(x))
    y_ref = x * jnp.tanh(jnp.exp(x))
    assert y.shape == x.shape and y.dtype == x.dtype
    assert jnp.allclose(y, y_ref, atol=1e-6, rtol=1e-6)

    # Lane-ragged shape: exercises the no-copy trailing-dim-collapse path.
    x2 = jax.random.normal(jax.random.PRNGKey(1), (3, 5, 7, 11), dtype=jnp.float32)
    y2 = jax.block_until_ready(mish1(x2))
    y2_ref = x2 * jnp.tanh(jnp.exp(x2))
    assert y2.shape == x2.shape
    assert jnp.allclose(y2, y2_ref, atol=1e-6, rtol=1e-6)

    # Lane-aligned but row-ragged grid: forces multi-step grid with a masked
    # boundary block (small tile budget just to exercise the path).
    x3 = jax.random.normal(jax.random.PRNGKey(2), (1, 5, 104, 128), dtype=jnp.float32)
    y3 = jax.block_until_ready(mish1(x3, tile_bytes=64 * 1024))
    y3_ref = x3 * jnp.tanh(jnp.exp(x3))
    assert jnp.allclose(y3, y3_ref, atol=1e-6, rtol=1e-6)

    # bf16 input: exercises the bf16 EUP compute path (bf16-level tolerance).
    x4 = jax.random.normal(jax.random.PRNGKey(3), (2, 8, 32, 128), dtype=jnp.bfloat16)
    y4 = jax.block_until_ready(mish1(x4))
    x4f = x4.astype(jnp.float32)
    y4_ref = x4f * jnp.tanh(jnp.exp(x4f))
    assert y4.dtype == jnp.bfloat16
    assert jnp.allclose(y4.astype(jnp.float32), y4_ref, atol=2e-2, rtol=5e-2)

    print("KERNEL_OK")
</pallas_src>

<mosaic_0001>
module attributes {stable_mosaic.version = 11 : i64} {
  func.func @_mish1_kernel(%arg0: i32, %arg1: memref<16x128xf32, #tpu.memory_space<vmem>>, %arg2: memref<16x128xf32, #tpu.memory_space<vmem>>) attributes {dimension_semantics = [#tpu.dimension_semantics<parallel>], iteration_bounds = array<i64: 1>, scalar_prefetch = 0 : i64, scratch_operands = 0 : i64, tpu.core_type = #tpu.core_type<tc>, window_params = [{transform_indices = @transform_0, window_bounds = array<i64: 16, 128>}, {transform_indices = @transform_1, window_bounds = array<i64: 16, 128>}]} {
    %c0 = arith.constant 0 : index
    %c0_0 = arith.constant 0 : index
    %0 = vector.load %arg1[%c0, %c0_0] : memref<16x128xf32, #tpu.memory_space<vmem>>, vector<16x128xf32>
    %1 = math.exp %0 : vector<16x128xf32>
    %2 = math.tanh %1 : vector<16x128xf32>
    %3 = arith.mulf %0, %2 : vector<16x128xf32>
    %c0_1 = arith.constant 0 : index
    %c0_2 = arith.constant 0 : index
    %4 = vector.load %arg2[%c0_1, %c0_2] : memref<16x128xf32, #tpu.memory_space<vmem>>, vector<16x128xf32>
    tpu.vector_store %arg2[%c0_1, %c0_2], %3 {strides = array<i32>} : memref<16x128xf32, #tpu.memory_space<vmem>>, vector<16x128xf32>,
    return
  }
  func.func @transform_0(%arg0: i32) -> (i32, i32) {
    %c0_i32 = arith.constant 0 : i32
    %c0_i32_0 = arith.constant 0 : i32
    return %arg0, %c0_i32 : i32, i32
  }
  func.func @transform_1(%arg0: i32) -> (i32, i32) {
    %c0_i32 = arith.constant 0 : i32
    %c0_i32_0 = arith.constant 0 : i32
    return %arg0, %c0_i32 : i32, i32
  }
}

</mosaic_0001>

<bundles_post_ra>
// kernel: tpu_custom_call.1
= control target key start
LH: loop header
LB: loop body
LE: loop exit
PB: predicated region body
PF: predicated region fallthrough
CT: control target
= control target key end

     0   :  { %6 = vsyncpa [#allocation3], 0  ;;  %s140_s0 = inlined_call_operand.hbm [shape: f32[16,128], index: 0, kind: input, shape index: {}]   ;;  %s141_s1 = inlined_call_operand.hbm [shape: f32[16,128], index: 1, kind: output, shape index: {}]  }
   0x1   :  { %7 = vsyncpa [#allocation4], 0  ;;  %s12_s8 = sshll.u32 %s140_s0, 4  ;;  %s120_s9 = smov [#allocation2]   ;;  %s13_s8 = int_to_ptr.hbm [resolvable:$true] %s12_s8 }
   0x2   :  { %s14_s10 = sshll.u32 %s120_s9, 4  ;;  %s121_s11 = smov 128   ;;  %s15_s10 = int_to_ptr.vmem [resolvable:$true] %s14_s10 }
   0x3   :  { %s122_s12 = smov 8  }
   0x4   :  { %20 = dma.hbm_to_vmem [thread:$0]  %s13_s8, 256, %s15_s10, [#allocation3], %s121_s11, %s121_s11, %s122_s12  }
   0x5   :  { %116 = dma.done.wait [#allocation3], 256  }
   0x6   :  { %117 = vsyncadd [#allocation3], 4294967040  ;;  %v25_v0 = vld [vmem:[#allocation2] sm:$0xff]  ;;  %v26_v1 = vld [vmem:[#allocation2 + $0x8] sm:$0xff]  ;;  %s123_s0 = smov [#allocation5]   ;;  %s43_s16 = sshll.u32 %s141_s1, 4  ;;  %s44_s16 = int_to_ptr.hbm [resolvable:$true] %s43_s16 }
   0x7   :  { %v27_v2 = vmul.f32 1.442695, %v25_v0  ;;  %v29_v3 = vmul.f32 1.442695, %v26_v1  ;;  %s41_s13 = sshll.u32 %s123_s0, 4  ;;  %s42_s13 = int_to_ptr.vmem [resolvable:$true] %s41_s13 }
   0x9   :  { %60 = vpow2.f32 %v27_v2 }
   0xa   :  { %62 = vpow2.f32 %v29_v3 }
   0xf   :  { %v61_v4 = vpop.eup %60 }
  0x10   :  { %v63_v5 = vpop.eup %62  ;;  %64 = vtanh.f32 %v61_v4 }
  0x11   :  { %66 = vtanh.f32 %v63_v5 }
  0x16   :  { %v65_v6 = vpop.eup %64 }
  0x17   :  { %v67_v7 = vpop.eup %66  ;;  %v33_v8 = vmul.f32 %v65_v6, %v25_v0 }
  0x18   :  { %v34_v9 = vmul.f32 %v67_v7, %v26_v1 }
  0x19   :  { %35 = vst [vmem:[#allocation5] sm:$0xff] %v33_v8 }
  0x1a   :  { %36 = vst [vmem:[#allocation5 + $0x8] sm:$0xff] %v34_v9 }
  0x1b   :  { %49 = dma.vmem_to_hbm [thread:$0]  %s42_s13, 256, %s44_s16, [#allocation4], %s121_s11, %s121_s11, %s122_s12  }
  0x1c   :  { %118 = dma.done.wait [#allocation4], 256  }
  0x1d   :  { %119 = vsyncadd [#allocation4], 4294967040 }
  0x1e   :  { %54 = vsyncpa [#allocation3], 1 }
  0x1f   :  { %55 = vsyncpa [#allocation4], 1 }

</bundles_post_ra>
